<compile_context>
chip_gen: v7x
topology: tpu7x:2x2x1
jax: 0.10.0
libtpu: 0.0.40
codegen_flags: <defaults>
</compile_context>

<pallas_src>
import functools
import math

import jax
import jax.numpy as jnp
from jax.experimental import pallas as pl
from jax.experimental.pallas import tpu as pltpu


def _cdiv(a, b):
    return (a + b - 1) // b


def _round_up(x, m):
    return _cdiv(x, m) * m


def _physical_vmem_bytes():
    """Per-core VMEM capacity; conservative fallback if the query fails."""
    try:
        return int(pltpu.get_tpu_info().vmem_capacity_bytes)
    except Exception:
        return 64 << 20  # v7x per-TensorCore (smallest of v5e/v6e/v7x)


def encoder_kernel(x_ref, w_ref, b_ref, o_ref, *, vocab, tk, nk_per_split,
                   mask_last):
    """One (vocab-split, K-tile) grid step of code_logits = x @ W_t + b.

    x_ref: (B, tk)  word-count tile (f32; the last tile may contain undefined
                    lanes past `vocab`, masked below)
    w_ref: (tk, L)  cached weight tile (already transposed/padded/cast at init)
    b_ref: (1, L)   bias (resident)
    o_ref: (B, L)   f32 partial-output slab for this vocab split, resident
                    across the K axis (accumulator)
    """
    s = pl.program_id(0)   # vocab split  ("parallel" -> v7x megacore)
    k = pl.program_id(1)   # K tile       ("arbitrary" reduction)

    # Initialise the resident output with the bias (split 0 only) instead of
    # zeroing + a separate bias pass on the last K step.
    @pl.when(k == 0)
    def _():
        use_bias = (s == 0).astype(jnp.float32)
        o_ref[...] = jnp.broadcast_to(b_ref[...] * use_bias, o_ref.shape)

    x = x_ref[...]
    if mask_last:
        # The K grid covers a zero-padded vocab; the matching x block can read
        # undefined lanes past `vocab` -- zero them before the MXU (the cached
        # weight rows there are already explicit zeros).
        col0 = (s * nk_per_split + k) * tk
        cols = jax.lax.broadcasted_iota(jnp.int32, x.shape, 1) + col0
        x = jnp.where(cols < vocab, x, 0.0)

    w = w_ref[...]
    if w.dtype != jnp.float32:
        w = w.astype(jnp.float32)   # cheap VPU up-cast; HBM stream stays bf16

    o_ref[...] += jnp.dot(x, w, preferred_element_type=jnp.float32)


def _plan_tiling(vocab, latent, w_elt_bytes, *, max_batch_rows, max_k_tile):
    """Remainder-aware, generation-aware K tiling."""
    vmem_phys = _physical_vmem_bytes()
    # Tile budget: large on 128-MiB-VMEM parts (v5e/v6e) so realistic vocabs
    # collapse to a single K step; conservative on 64-MiB parts (v7x).
    tile_budget = (56 << 20) if vmem_phys >= (96 << 20) else (20 << 20)

    l_lanes = _round_up(latent, 128)           # weight tile lane-padded to 128
    rows = _round_up(max(max_batch_rows, 8), 8)
    per_col = (2 * rows * 4                    # double-buffered x columns (f32)
               + 2 * l_lanes * w_elt_bytes     # double-buffered weight columns
               + l_lanes * 4)                  # in-kernel f32 up-cast of w tile
    tk_max = max(128, (tile_budget // per_col) // 128 * 128)
    if max_k_tile is not None:
        tk_max = min(tk_max, max(128, _round_up(int(max_k_tile), 128)))

    if tk_max >= vocab:
        # Whole reduction in one step; block dims equal the full array dims.
        return dict(tk=vocab, nk_total=1, num_splits=1, v_pad=vocab,
                    vmem_phys=vmem_phys)

    nk = _cdiv(vocab, tk_max)
    num_splits = 2 if nk >= 2 else 1           # engage v7x's 2nd TensorCore
    nk = _round_up(nk, num_splits)
    tk = _round_up(_cdiv(vocab, nk), 128)      # padding < nk*128 columns
    v_pad = nk * tk
    # Every K block we index must overlap real columns (guards degenerate
    # shapes; always true for realistic vocab sizes with these budgets).
    assert (nk - 1) * tk < vocab, "degenerate K tiling (empty trailing tile)"
    return dict(tk=tk, nk_total=nk, num_splits=num_splits, v_pad=v_pad,
                vmem_phys=vmem_phys)


class SemanticHasherEncoder:
    """Pallas implementation of SematicHasher.forward (the encoder Linear).

    Weight preparation (transpose, pad, cast) happens once at construction
    and is cached; __call__ only streams the cached arrays through the kernel.
    """

    def __init__(self, weight, bias, *, weight_dtype=jnp.bfloat16,
                 max_batch_rows=64, max_k_tile=None):
        latent, vocab = weight.shape
        assert bias.shape == (latent,)
        self.latent = int(latent)
        self.vocab = int(vocab)
        self.weight_dtype = jnp.dtype(weight_dtype)

        plan = _plan_tiling(self.vocab, self.latent,
                            self.weight_dtype.itemsize,
                            max_batch_rows=max_batch_rows,
                            max_k_tile=max_k_tile)
        self.tk = plan["tk"]
        self.nk_total = plan["nk_total"]
        self.num_splits = plan["num_splits"]
        self.nk_per_split = self.nk_total // self.num_splits
        self.v_pad = plan["v_pad"]
        self.vmem_phys = plan["vmem_phys"]
        self.mask_last = self.v_pad != self.vocab

        # --- one-time weight prep (cached) ---------------------------------
        # (V, L) layout -> canonical [B,K] x [K,L] MXU contraction in-kernel;
        # zero-padded vocab rows so no K tile reads past the weight; cast once
        # to the streaming dtype (bf16 by default).
        w = jnp.asarray(weight, jnp.float32).T                     # (V, L)
        if self.v_pad != self.vocab:
            w = jnp.pad(w, ((0, self.v_pad - self.vocab), (0, 0)))
        self.w_cached = w.astype(self.weight_dtype)                # (V_pad, L)
        self.b2d = jnp.asarray(bias, jnp.float32).reshape(1, self.latent)

    def _vmem_limit_bytes(self, batch):
        b_pad = _round_up(max(batch, 8), 8)
        l_lanes = _round_up(self.latent, 128)
        w_elt = self.weight_dtype.itemsize
        tile = (2 * b_pad * self.tk * 4            # x (double-buffered)
                + 2 * self.tk * l_lanes * w_elt    # w (double-buffered)
                + self.tk * l_lanes * 4            # f32 up-cast of the w tile
                + 2 * b_pad * l_lanes * 4          # resident output slab
                + 8 * l_lanes * 4)                 # bias
        limit = max(int(tile * 1.3) + (4 << 20), 32 << 20)
        return min(limit, int(self.vmem_phys * 0.85))

    def __call__(self, word_counts):
        batch, vocab = word_counts.shape
        assert vocab == self.vocab, "vocab mismatch with cached weight"
        x = jnp.asarray(word_counts, jnp.float32)   # keep counts exact (f32)

        latent, tk, nkps = self.latent, self.tk, self.nk_per_split
        kernel = functools.partial(
            encoder_kernel, vocab=self.vocab, tk=tk, nk_per_split=nkps,
            mask_last=self.mask_last)

        out = pl.pallas_call(
            kernel,
            out_shape=jax.ShapeDtypeStruct((self.num_splits, batch, latent),
                                           jnp.float32),
            grid_spec=pltpu.PrefetchScalarGridSpec(
                num_scalar_prefetch=0,
                grid=(self.num_splits, nkps),
                in_specs=[
                    # word_counts: (B, tk) tile; vocab-block index s*nkps + k
                    pl.BlockSpec((batch, tk),
                                 lambda s, k, nkps=nkps: (0, s * nkps + k)),
                    # cached weight: (tk, L) tile of the (V_pad, L) array
                    pl.BlockSpec((tk, latent),
                                 lambda s, k, nkps=nkps: (s * nkps + k, 0)),
                    # bias: resident (1, L)
                    pl.BlockSpec((1, latent), lambda s, k: (0, 0)),
                ],
                out_specs=pl.BlockSpec((None, batch, latent),
                                       lambda s, k: (s, 0, 0)),
            ),
            compiler_params=pltpu.CompilerParams(
                dimension_semantics=("parallel", "arbitrary"),
                vmem_limit_bytes=self._vmem_limit_bytes(batch),
            ),
        )(x, self.w_cached, self.b2d)

        if self.num_splits > 1:
            return out.sum(axis=0)        # tiny (splits, B, L) epilogue
        return out[0]


if __name__ == "__main__":
    # Small, TPU-friendly shapes consistent with the module:
    #   batch=8, vocab_size=512, latent_features=64
    B, V, L = 8, 512, 64
    HI = jax.lax.Precision.HIGHEST

    key = jax.random.PRNGKey(0)
    k_x, k_w, k_b = jax.random.split(key, 3)

    # Synthetic "word counts": small non-negative integers (exact in f32).
    word_counts = jnp.floor(jax.random.uniform(k_x, (B, V), dtype=jnp.float32) * 5.0)

    # Deterministic init mimicking nn.Linear's U(-1/sqrt(in), 1/sqrt(in)).
    bound = 1.0 / math.sqrt(V)
    weight = jax.random.uniform(k_w, (L, V), minval=-bound, maxval=bound,
                                dtype=jnp.float32)
    bias = jax.random.uniform(k_b, (L,), minval=-bound, maxval=bound,
                              dtype=jnp.float32)

    # 1) Exact f32-weight path: tk == V -> single K step, single split.
    enc_f32 = SemanticHasherEncoder(weight, bias, weight_dtype=jnp.float32)
    out = jax.block_until_ready(enc_f32(word_counts))
    ref = jnp.matmul(word_counts, weight.T, precision=HI) + bias
    assert out.shape == (B, L)
    assert jnp.allclose(out, ref, atol=2e-3, rtol=2e-3)

    # 2) Default bf16-weight streaming (halves the dominant HBM stream;
    #    word_counts stay f32, accumulation stays f32).
    enc_bf16 = SemanticHasherEncoder(weight, bias)   # weight_dtype=bf16 default
    out_bf = jax.block_until_ready(enc_bf16(word_counts))
    w_q = weight.astype(jnp.bfloat16).astype(jnp.float32)
    ref_bf = jnp.matmul(word_counts, w_q.T, precision=HI) + bias
    assert jnp.allclose(out_bf, ref_bf, atol=1e-2, rtol=1e-2)

    # 3) Tiled path: vocab NOT a multiple of the K tile -> exercises the
    #    K-reduction accumulator, the 2-way vocab split + epilogue sum, and
    #    the in-kernel remainder mask (no per-call padding of any operand).
    V2 = 1000
    wc2 = jnp.floor(jax.random.uniform(k_x, (B, V2), dtype=jnp.float32) * 5.0)
    w2 = jax.random.uniform(k_w, (L, V2), minval=-bound, maxval=bound,
                            dtype=jnp.float32)
    enc_tiled = SemanticHasherEncoder(w2, bias, weight_dtype=jnp.float32,
                                      max_k_tile=256)
    out2 = jax.block_until_ready(enc_tiled(wc2))
    ref2 = jnp.matmul(wc2, w2.T, precision=HI) + bias
    assert jnp.allclose(out2, ref2, atol=2e-3, rtol=2e-3)

    print("KERNEL_OK")
</pallas_src>

<mosaic_0001>
module attributes {stable_mosaic.version = 11 : i64} {
  func.func @encoder_kernel(%arg0: i32, %arg1: i32, %arg2: memref<8x512xf32, #tpu.memory_space<vmem>>, %arg3: memref<512x64xf32, #tpu.memory_space<vmem>>, %arg4: memref<1x64xf32, #tpu.memory_space<vmem>>, %arg5: memref<1x8x64xf32, #tpu.memory_space<vmem>>) attributes {dimension_semantics = [#tpu.dimension_semantics<parallel>, #tpu.dimension_semantics<arbitrary>], iteration_bounds = array<i64: 1, 1>, scalar_prefetch = 0 : i64, scratch_operands = 0 : i64, tpu.core_type = #tpu.core_type<tc>, window_params = [{transform_indices = @transform_0, window_bounds = array<i64: 8, 512>}, {transform_indices = @transform_1, window_bounds = array<i64: 512, 64>}, {pipeline_mode = #tpu.pipeline_mode<synchronous>, transform_indices = @transform_2, window_bounds = array<i64: 1, 64>}, {transform_indices = @transform_3, window_bounds = array<i64: 1, 8, 64>}]} {
    %c0_i32 = arith.constant 0 : i32
    %0 = arith.cmpi eq, %arg1, %c0_i32 : i32
    %1 = arith.extui %0 : i1 to i32
    %c0_i32_0 = arith.constant 0 : i32
    %2 = arith.cmpi ne, %1, %c0_i32_0 : i32
    scf.if %2 {
      %c0_i32_10 = arith.constant 0 : i32
      %12 = arith.cmpi eq, %arg0, %c0_i32_10 : i32
      %13 = arith.extui %12 : i1 to i32
      %14 = arith.sitofp %13 : i32 to f32
      %c0_11 = arith.constant 0 : index
      %c0_12 = arith.constant 0 : index
      %15 = vector.load %arg4[%c0_11, %c0_12] : memref<1x64xf32, #tpu.memory_space<vmem>>, vector<1x64xf32>
      %16 = vector.broadcast %14 : f32 to vector<1x64xf32>
      %17 = arith.mulf %15, %16 : vector<1x64xf32>
      %18 = vector.shape_cast %17 : vector<1x64xf32> to vector<1x64xf32>
      %19 = vector.broadcast %18 : vector<1x64xf32> to vector<8x64xf32>
      %c0_13 = arith.constant 0 : index
      %c0_14 = arith.constant 0 : index
      %c0_15 = arith.constant 0 : index
      %20 = vector.load %arg5[%c0_13, %c0_14, %c0_15] : memref<1x8x64xf32, #tpu.memory_space<vmem>>, vector<1x8x64xf32>
      %21 = vector.shape_cast %20 : vector<1x8x64xf32> to vector<8x64xf32>
      %22 = vector.shape_cast %19 : vector<8x64xf32> to vector<1x8x64xf32>
      tpu.vector_store %arg5[%c0_13, %c0_14, %c0_15], %22 {strides = array<i32>} : memref<1x8x64xf32, #tpu.memory_space<vmem>>, vector<1x8x64xf32>,
    } else {
    }
    %c0 = arith.constant 0 : index
    %c0_1 = arith.constant 0 : index
    %3 = vector.load %arg2[%c0, %c0_1] : memref<8x512xf32, #tpu.memory_space<vmem>>, vector<8x512xf32>
    %c0_2 = arith.constant 0 : index
    %c0_3 = arith.constant 0 : index
    %4 = vector.load %arg3[%c0_2, %c0_3] : memref<512x64xf32, #tpu.memory_space<vmem>>, vector<512x64xf32>
    %c0_4 = arith.constant 0 : index
    %c0_5 = arith.constant 0 : index
    %c0_6 = arith.constant 0 : index
    %5 = vector.load %arg5[%c0_4, %c0_5, %c0_6] : memref<1x8x64xf32, #tpu.memory_space<vmem>>, vector<1x8x64xf32>
    %6 = vector.shape_cast %5 : vector<1x8x64xf32> to vector<8x64xf32>
    %cst = arith.constant dense<0.000000e+00> : vector<8x64xf32>
    %7 = tpu.matmul %3, %4, %cst {dimension_numbers = #tpu.dot_dimension_numbers<[1], [0], [0], [1], [0, 0, 1, 1], [], []>} : vector<8x512xf32>, vector<512x64xf32>, vector<8x64xf32> -> vector<8x64xf32>
    %8 = arith.addf %6, %7 : vector<8x64xf32>
    %c0_7 = arith.constant 0 : index
    %c0_8 = arith.constant 0 : index
    %c0_9 = arith.constant 0 : index
    %9 = vector.load %arg5[%c0_7, %c0_8, %c0_9] : memref<1x8x64xf32, #tpu.memory_space<vmem>>, vector<1x8x64xf32>
    %10 = vector.shape_cast %9 : vector<1x8x64xf32> to vector<8x64xf32>
    %11 = vector.shape_cast %8 : vector<8x64xf32> to vector<1x8x64xf32>
    tpu.vector_store %arg5[%c0_7, %c0_8, %c0_9], %11 {strides = array<i32>} : memref<1x8x64xf32, #tpu.memory_space<vmem>>, vector<1x8x64xf32>,
    return
  }
  func.func @transform_0(%arg0: i32, %arg1: i32) -> (i32, i32) {
    %c1_i32 = arith.constant 1 : i32
    %0 = arith.muli %arg0, %c1_i32 : i32
    %1 = arith.addi %0, %arg1 : i32
    %c0_i32 = arith.constant 0 : i32
    %c0_i32_0 = arith.constant 0 : i32
    return %c0_i32, %1 : i32, i32
  }
  func.func @transform_1(%arg0: i32, %arg1: i32) -> (i32, i32) {
    %c1_i32 = arith.constant 1 : i32
    %0 = arith.muli %arg0, %c1_i32 : i32
    %1 = arith.addi %0, %arg1 : i32
    %c0_i32 = arith.constant 0 : i32
    %c0_i32_0 = arith.constant 0 : i32
    return %1, %c0_i32 : i32, i32
  }
  func.func @transform_2(%arg0: i32, %arg1: i32) -> (i32, i32) {
    %c0_i32 = arith.constant 0 : i32
    %c0_i32_0 = arith.constant 0 : i32
    %c0_i32_1 = arith.constant 0 : i32
    return %c0_i32, %c0_i32_0 : i32, i32
  }
  func.func @transform_3(%arg0: i32, %arg1: i32) -> (i32, i32, i32) {
    %c0_i32 = arith.constant 0 : i32
    %c0_i32_0 = arith.constant 0 : i32
    %c0_i32_1 = arith.constant 0 : i32
    return %arg0, %c0_i32, %c0_i32_0 : i32, i32, i32
  }
}

</mosaic_0001>

<bundles_post_ra>
// kernel: tpu_custom_call.1
= control target key start
LH: loop header
LB: loop body
LE: loop exit
PB: predicated region body
PF: predicated region fallthrough
CT: control target
= control target key end

     0   :  { %s715_s0 = inlined_call_operand.vmem [shape: f32[8,512], index: 0, kind: input, shape index: {}]   ;;  %s716_s1 = inlined_call_operand.vmem [shape: f32[512,64], index: 1, kind: input, shape index: {}]   ;;  %s717_s2 = inlined_call_operand.vmem [shape: f32[1,64], index: 2, kind: input, shape index: {}]   ;;  %s718_s3 = inlined_call_operand.hbm [shape: f32[1,8,64], index: 3, kind: output, shape index: {}]  }
   0x1   :  { %v97_v0 = vld [vmem:[%s716_s1 + $0x80] sm:$0xff]  ;;  %v98_v1 = vld [vmem:[%s716_s1 + $0x88] sm:$0xff]  ;;  %v99_v11 = vld [vmem:[%s716_s1 + $0x90] sm:$0xff] }
   0x2   :  { %v129_v2 = vld [vmem:[%s716_s1 + $0x180] sm:$0xff]  ;;  %v386_v3 = vpack.c.bf16 %v98_v1, %v97_v0  ;;  %v130_v4 = vld [vmem:[%s716_s1 + $0x188] sm:$0xff]  ;;  %v100_v13 = vld [vmem:[%s716_s1 + $0x98] sm:$0xff] }
   0x3   :  { %v81_v5 = vld [vmem:[%s716_s1] sm:$0xff]  ;;  %v82_v6 = vld [vmem:[%s716_s1 + $0x8] sm:$0xff]  ;;  %v418_v7 = vpack.c.bf16 %v130_v4, %v129_v2  ;;  %v131_v14 = vld [vmem:[%s716_s1 + $0x190] sm:$0xff]  ;;  %v390_v16 = vpack.c.bf16 %v100_v13, %v99_v11 }
   0x4   :  { %v388_v8 = vpack.c.bf16 %v82_v6, %v81_v5  ;;  %v113_v9 = vld [vmem:[%s716_s1 + $0x100] sm:$0xff]  ;;  %v114_v10 = vld [vmem:[%s716_s1 + $0x108] sm:$0xff]  ;;  %387 = vmatprep.subr.bf16.mxu0 %v386_v3  ;;  %v132_v15 = vld [vmem:[%s716_s1 + $0x198] sm:$0xff] }
   0x5   :  { %v420_v12 = vpack.c.bf16 %v114_v10, %v113_v9  ;;  %419 = vmatprep.subr.bf16.mxu1 %v418_v7  ;;  %v422_v17 = vpack.c.bf16 %v132_v15, %v131_v14  ;;  %v83_v18 = vld [vmem:[%s716_s1 + $0x10] sm:$0xff]  ;;  %v84_v19 = vld [vmem:[%s716_s1 + $0x18] sm:$0xff]  ;;  %v101_v23 = vld [vmem:[%s716_s1 + $0xa0] sm:$0xff] }
   0x6   :  { %389 = vmatpush3.bf16.msra.mxu0 %v388_v8  ;;  %v115_v20 = vld [vmem:[%s716_s1 + $0x110] sm:$0xff]  ;;  %v392_v21 = vpack.c.bf16 %v84_v19, %v83_v18  ;;  %v116_v22 = vld [vmem:[%s716_s1 + $0x118] sm:$0xff]  ;;  %v102_v24 = vld [vmem:[%s716_s1 + $0xa8] sm:$0xff] }
   0x7   :  { %421 = vmatpush3.bf16.msra.mxu1 %v420_v12  ;;  %391 = vmatprep.subr.bf16.mxu0 %v390_v16  ;;  %v424_v25 = vpack.c.bf16 %v116_v22, %v115_v20  ;;  %v394_v26 = vpack.c.bf16 %v102_v24, %v101_v23  ;;  %v133_v27 = vld [vmem:[%s716_s1 + $0x1a0] sm:$0xff]  ;;  %v134_v28 = vld [vmem:[%s716_s1 + $0x1a8] sm:$0xff]  ;;  %v103_v35 = vld [vmem:[%s716_s1 + $0xb0] sm:$0xff] }
   0x8   :  { %423 = vmatprep.subr.bf16.mxu1 %v422_v17  ;;  %v85_v29 = vld [vmem:[%s716_s1 + $0x20] sm:$0xff]  ;;  %v426_v30 = vpack.c.bf16 %v134_v28, %v133_v27  ;;  %v86_v31 = vld [vmem:[%s716_s1 + $0x28] sm:$0xff]  ;;  %v104_v36 = vld [vmem:[%s716_s1 + $0xb8] sm:$0xff] }
   0x9   :  { %v117_v32 = vld [vmem:[%s716_s1 + $0x120] sm:$0xff]  ;;  %v118_v33 = vld [vmem:[%s716_s1 + $0x128] sm:$0xff]  ;;  %v396_v34 = vpack.c.bf16 %v86_v31, %v85_v29  ;;  %v135_v37 = vld [vmem:[%s716_s1 + $0x1b0] sm:$0xff]  ;;  %v398_v39 = vpack.c.bf16 %v104_v36, %v103_v35 }
   0xa   :  { %393 = vmatpush3.bf16.msra.mxu0 %v392_v21  ;;  %v428_v38 = vpack.c.bf16 %v118_v33, %v117_v32  ;;  %v136_v40 = vld [vmem:[%s716_s1 + $0x1b8] sm:$0xff]  ;;  %v87_v41 = vld [vmem:[%s716_s1 + $0x30] sm:$0xff]  ;;  %v105_v46 = vld [vmem:[%s716_s1 + $0xc0] sm:$0xff] }
   0xb   :  { %425 = vmatpush3.bf16.msra.mxu1 %v424_v25  ;;  %395 = vmatprep.subr.bf16.mxu0 %v394_v26  ;;  %v88_v42 = vld [vmem:[%s716_s1 + $0x38] sm:$0xff]  ;;  %v430_v43 = vpack.c.bf16 %v136_v40, %v135_v37  ;;  %v119_v44 = vld [vmem:[%s716_s1 + $0x130] sm:$0xff]  ;;  %v106_v47 = vld [vmem:[%s716_s1 + $0xc8] sm:$0xff] }
   0xc   :  { %427 = vmatprep.subr.bf16.mxu1 %v426_v30  ;;  %v120_v45 = vld [vmem:[%s716_s1 + $0x138] sm:$0xff]  ;;  %v137_v48 = vld [vmem:[%s716_s1 + $0x1c0] sm:$0xff]  ;;  %v138_v49 = vld [vmem:[%s716_s1 + $0x1c8] sm:$0xff]  ;;  %v400_v50 = vpack.c.bf16 %v88_v42, %v87_v41  ;;  %v402_v52 = vpack.c.bf16 %v106_v47, %v105_v46 }
   0xd   :  { %v432_v51 = vpack.c.bf16 %v120_v45, %v119_v44  ;;  %v89_v53 = vld [vmem:[%s716_s1 + $0x40] sm:$0xff]  ;;  %v90_v54 = vld [vmem:[%s716_s1 + $0x48] sm:$0xff]  ;;  %v434_v56 = vpack.c.bf16 %v138_v49, %v137_v48  ;;  %v107_v58 = vld [vmem:[%s716_s1 + $0xd0] sm:$0xff] }
   0xe   :  { %397 = vmatpush3.bf16.msra.mxu0 %v396_v34  ;;  %v121_v55 = vld [vmem:[%s716_s1 + $0x140] sm:$0xff]  ;;  %v122_v57 = vld [vmem:[%s716_s1 + $0x148] sm:$0xff]  ;;  %v108_v59 = vld [vmem:[%s716_s1 + $0xd8] sm:$0xff]  ;;  %v404_v62 = vpack.c.bf16 %v90_v54, %v89_v53 }
   0xf   :  { %429 = vmatpush3.bf16.msra.mxu1 %v428_v38  ;;  %399 = vmatprep.subr.bf16.mxu0 %v398_v39  ;;  %v139_v60 = vld [vmem:[%s716_s1 + $0x1d0] sm:$0xff]  ;;  %v140_v61 = vld [vmem:[%s716_s1 + $0x1d8] sm:$0xff]  ;;  %v436_v63 = vpack.c.bf16 %v122_v57, %v121_v55  ;;  %v406_v0 = vpack.c.bf16 %v108_v59, %v107_v58  ;;  %v109_v6 = vld [vmem:[%s716_s1 + $0xe0] sm:$0xff] }
  0x10   :  { %431 = vmatprep.subr.bf16.mxu1 %v430_v43  ;;  %v91_v1 = vld [vmem:[%s716_s1 + $0x50] sm:$0xff]  ;;  %v92_v2 = vld [vmem:[%s716_s1 + $0x58] sm:$0xff]  ;;  %v438_v4 = vpack.c.bf16 %v140_v61, %v139_v60  ;;  %v110_v7 = vld [vmem:[%s716_s1 + $0xe8] sm:$0xff] }
  0x11   :  { %v123_v3 = vld [vmem:[%s716_s1 + $0x150] sm:$0xff]  ;;  %v124_v5 = vld [vmem:[%s716_s1 + $0x158] sm:$0xff]  ;;  %v141_v8 = vld [vmem:[%s716_s1 + $0x1e0] sm:$0xff]  ;;  %v408_v10 = vpack.c.bf16 %v92_v2, %v91_v1  ;;  %v410_v15 = vpack.c.bf16 %v110_v7, %v109_v6 }
  0x12   :  { %401 = vmatpush3.bf16.msra.mxu0 %v400_v50  ;;  %v142_v9 = vld [vmem:[%s716_s1 + $0x1e8] sm:$0xff]  ;;  %v93_v11 = vld [vmem:[%s716_s1 + $0x60] sm:$0xff]  ;;  %v440_v14 = vpack.c.bf16 %v124_v5, %v123_v3  ;;  %v80_v18 = vld [vmem:[%s715_s0 + $0x18] sm:$0xff] }
  0x13   :  { %433 = vmatpush3.bf16.msra.mxu1 %v432_v51  ;;  %403 = vmatprep.subr.bf16.mxu0 %v402_v52  ;;  %v94_v12 = vld [vmem:[%s716_s1 + $0x68] sm:$0xff]  ;;  %v125_v13 = vld [vmem:[%s716_s1 + $0x160] sm:$0xff]  ;;  %v442_v19 = vpack.c.bf16 %v142_v9, %v141_v8  ;;  %v111_v20 = vld [vmem:[%s716_s1 + $0xf0] sm:$0xff] }
  0x14   :  { %435 = vmatprep.subr.bf16.mxu1 %v434_v56  ;;  %v126_v16 = vld [vmem:[%s716_s1 + $0x168] sm:$0xff]  ;;  %v112_v21 = vld [vmem:[%s716_s1 + $0xf8] sm:$0xff] }
  0x15   :  { %v78_v17 = vld [vmem:[%s715_s0 + $0x8] sm:$0xff] }
  0x16   :  { %405 = vmatpush3.bf16.msra.mxu0 %v404_v62  ;;  %210 = vmatprep.mubr.f32.mxu0 %v78_v17 }
  0x17   :  { %437 = vmatpush3.bf16.msra.mxu1 %v436_v63  ;;  %407 = vmatprep.subr.bf16.mxu0 %v406_v0 }
  0x18   :  { %439 = vmatprep.subr.bf16.mxu1 %v438_v4 }
  0x19   :  { %8 = vsyncpa [#allocation3], 0  ;;  %v143_v22 = vld [vmem:[%s716_s1 + $0x1f0] sm:$0xff]  ;;  %v144_v23 = vld [vmem:[%s716_s1 + $0x1f8] sm:$0xff]  ;;  %280 = vmatprep.mubr.f32.mxu1 %v80_v18  ;;  %v412_v24 = vpack.c.bf16 %v94_v12, %v93_v11  ;;  %v444_v25 = vpack.c.bf16 %v126_v16, %v125_v13  ;;  %v414_v26 = vpack.c.bf16 %v112_v21, %v111_v20  ;;  %vm75_vm0 = vcmask 523264   ;;  %s475_s14 = smov [#allocation2]  }
  0x1a   :  { %409 = vmatpush3.bf16.msra.mxu0 %v408_v10  ;;  %v95_v27 = vld [vmem:[%s716_s1 + $0x70] sm:$0xff]  ;;  %v96_v28 = vld [vmem:[%s716_s1 + $0x78] sm:$0xff]  ;;  %v446_v29 = vpack.c.bf16 %v144_v23, %v143_v22  ;;  %v77_v34 = vld [vmem:[%s715_s0] sm:$0xff]  ;;  %s295_s15 = sshll.u32 %s475_s14, 4  ;;  %s296_s15 = int_to_ptr.vmem [resolvable:$true] %s295_s15 }
  0x1b   :  { %441 = vmatpush3.bf16.msra.mxu1 %v440_v14  ;;  %411 = vmatprep.subr.bf16.mxu0 %v410_v15  ;;  %v127_v30 = vld [vmem:[%s716_s1 + $0x170] sm:$0xff]  ;;  %v128_v31 = vld [vmem:[%s716_s1 + $0x178] sm:$0xff]  ;;  %v416_v32 = vpack.c.bf16 %v96_v28, %v95_v27  ;;  %v315_v36 = vld [vmem:[%s717_s2] ss:$0 sm:$0xff]  ;;  %p456_p1 = scmp.lt.s32.totalorder %s296_s15, %s296_s15 }
  0x1c   :  { %443 = vmatprep.subr.bf16.mxu1 %v442_v19  ;;  %v448_v33 = vpack.c.bf16 %v128_v31, %v127_v30  ;;  %v79_v35 = vld [vmem:[%s715_s0 + $0x10] sm:$0xff]  ;;  %76 = vst.msk [vmem:[#allocation2] sm:$0xff] %vm75_vm0, %v315_v36  ;;  %s451_s0 = scalar_lea.vmem %s296_s15, 128 }
  0x1d   :  { %p452_p0 = scmp.ne.s32.totalorder %s296_s15, %s451_s0  ;;  %p457_p2 = scmp.lt.s32.totalorder %s451_s0, %s451_s0 }
  0x1e   :  { %413 = vmatpush3.bf16.msra.mxu0 %v412_v24 }
  0x1f   :  { %445 = vmatpush3.bf16.msra.mxu1 %v444_v25  ;;  %415 = vmatprep.subr.bf16.mxu0 %v414_v26  ;;  %p458_p3 = por %p457_p2, %p456_p1 }
  0x20   :  { %447 = vmatprep.subr.bf16.mxu1 %v446_v29 }
  0x21   :  { %p459_p4 = pnand %p458_p3, %p452_p0 }
  0x22   :  { %417 = vmatpush3.bf16.msra.mxu0 %v416_v32 }
  0x23   :  { %449 = vmatpush3.bf16.msra.mxu1 %v448_v33  ;;  %v145_v43 = vld [vmem:[#allocation2] sm:$0xff] }
  0x25   :  { %211 = vmatmul.mubr.f32.vlgmr.msra.gmra.mrb[0].mxu0 %v77_v34 }
  0x26   :  { %281 = vmatmul.mubr.f32.vlgmr.msra.gmra.mrb[0].mxu1 %v79_v35 }
  0xf8   :  { %v348_v37 = vpop.f32.mrb[0].mxu0 }
  0xf9   :  { %v383_v38 = vpop.f32.mrb[0].mxu1  ;;  %v349_v39 = vpop.f32.mrb[1].mxu0 }
  0xfa   :  { %v350_v40 = vadd.f32 %v349_v39, %v348_v37  ;;  %v384_v41 = vpop.f32.mrb[1].mxu1 }
  0xfb   :  { %v385_v42 = vadd.f32 %v384_v41, %v383_v38 }
  0xfd   :  { %v283_v44 = vadd.f32 %v385_v42, %v350_v40 }
  0xff   :  { %v286_v45 = vadd.f32 %v283_v44, %v145_v43 }
 0x101   :  { %288 = vst.msk [vmem:[#allocation2] sm:$0xff] %vm75_vm0, %v286_v45 }
 0x102   :  { %462 = shalt.err (!%p459_p4)
}
 0x103   :  { %s463_s17 = scalar_lea.hbm %s718_s3, 128 }
 0x104   :  { %p464_p5 = scmp.ne.s32.totalorder %s718_s3, %s463_s17  ;;  %p467_p6 = scmp.lt.u32.totalorder %s463_s17, %s718_s3 }
 0x106   :  { %p469_p7 = pnand %p467_p6, %p464_p5 }
 0x108   :  { %472 = shalt.err (!%p469_p7)
}
 0x109   :  { %298 = dma.vmem_to_hbm [thread:$0]  %s296_s15, 128, %s718_s3, [#allocation3]  }
 0x10a   :  { %473 = dma.done.wait [#allocation3], 128  }
 0x10b   :  { %474 = vsyncadd [#allocation3], 4294967168 }
 0x10c   :  { %302 = vsyncpa [#allocation3], 1 }

</bundles_post_ra>
